<compile_context>
chip_gen: v7x
topology: tpu7x:2x2x1
jax: 0.10.0
libtpu: 0.0.40
codegen_flags: <defaults>
</compile_context>

<pallas_src>
import jax
import jax.numpy as jnp
from jax.experimental import pallas as pl
from jax.experimental.pallas import tpu as pltpu

_LANE = 128
# Conservative per-call VMEM budget for the double-buffered M tiles (fits v5e's 16 MiB
# default scoped limit with headroom; bump for v6e/v5e's 128 MiB VMEM if sweeping).
_TILE_VMEM_BUDGET = 8 * 1024 * 1024
# Whole-problem-resident threshold for the gridless path.
_SINGLE_BLOCK_BUDGET = 12 * 1024 * 1024


def _cnn_head_kernel(xt_ref, wt_ref, b_ref, o_ref):
    # xt_ref : (9*Cin, TM) bf16  im2col activations, transposed (M on the lane axis)
    # wt_ref : (Cout, 9*Cin) bf16 conv weights, taps flattened into K
    # b_ref  : (Cout, 1) f32     bias
    # o_ref  : (Cout, TM)        transposed output (lane-dense)
    acc = jnp.dot(wt_ref[...], xt_ref[...], preferred_element_type=jnp.float32)
    o_ref[...] = (acc + b_ref[...]).astype(o_ref.dtype)


def _round_up(a, b):
    return (a + b - 1) // b * b


def cnn_head_forward(x, weight, bias, window_size, *, input_dtype=jnp.bfloat16):
    """x: (B, ws*ws, Cin); weight: (Cout, Cin, 3, 3) [PyTorch OIHW]; bias: (Cout,)."""
    B, P, Cin = x.shape
    ws = window_size
    assert P == ws * ws
    Cout = weight.shape[0]
    M = B * ws * ws
    K9 = 9 * Cin
    out_dtype = x.dtype
    in_bytes = jnp.dtype(input_dtype).itemsize
    out_bytes = jnp.dtype(out_dtype).itemsize

    # ---- im2col built directly in (9*Cin, M) layout (channels-first BEFORE 9x expansion) ----
    x_cf = jnp.transpose(x.reshape(B, ws, ws, Cin), (3, 0, 1, 2))          # (Cin, B, ws, ws)
    x_pad = jnp.pad(x_cf, ((0, 0), (0, 0), (1, 1), (1, 1)), mode="reflect")
    taps = [x_pad[:, :, dh:dh + ws, dw:dw + ws].reshape(Cin, M)
            for dh in range(3) for dw in range(3)]
    xt = jnp.concatenate(taps, axis=0).astype(input_dtype)                 # (9*Cin, M)

    # OIHW -> (Cout, 3, 3, Cin) -> (Cout, 9*Cin): same (dh, dw, cin) K ordering as the taps.
    wt = jnp.transpose(weight, (0, 2, 3, 1)).reshape(Cout, K9).astype(input_dtype)
    b2 = bias.astype(jnp.float32).reshape(Cout, 1)

    # Pad M to a lane multiple so the (Cout, M) stores are unmasked.
    M_pad = _round_up(M, _LANE)
    single_bytes = K9 * M_pad * in_bytes + Cout * K9 * in_bytes + Cout * M_pad * out_bytes

    if single_bytes <= _SINGLE_BLOCK_BUDGET:
        # ---- gridless path: whole problem resident in VMEM (no pipeline machinery) ----
        if M_pad != M:
            xt = jnp.pad(xt, ((0, 0), (0, M_pad - M)))
        out_t = pl.pallas_call(
            _cnn_head_kernel,
            out_shape=jax.ShapeDtypeStruct((Cout, M_pad), out_dtype),
            in_specs=[pl.BlockSpec(memory_space=pltpu.MemorySpace.VMEM)] * 3,
            out_specs=pl.BlockSpec(memory_space=pltpu.MemorySpace.VMEM),
            cost_estimate=pl.CostEstimate(
                flops=2 * Cout * K9 * M_pad,
                transcendentals=0,
                bytes_accessed=K9 * M_pad * in_bytes + Cout * K9 * in_bytes
                + Cout * M_pad * out_bytes),
        )(xt, wt, b2)
    else:
        # ---- tiled path: 1-D grid over M, double-buffered xt/out tiles ----
        per_col = 2 * K9 * in_bytes + 2 * Cout * out_bytes   # double-buffered bytes / column
        tm = max(_LANE, min(4096, (_TILE_VMEM_BUDGET // per_col) // _LANE * _LANE))
        M_pad = _round_up(M, tm)
        if M_pad != M:
            xt = jnp.pad(xt, ((0, 0), (0, M_pad - M)))
        grid = (M_pad // tm,)
        out_t = pl.pallas_call(
            _cnn_head_kernel,
            out_shape=jax.ShapeDtypeStruct((Cout, M_pad), out_dtype),
            grid=grid,
            in_specs=[
                pl.BlockSpec((K9, tm), lambda i: (0, i)),
                pl.BlockSpec((Cout, K9), lambda i: (0, 0)),
                pl.BlockSpec((Cout, 1), lambda i: (0, 0)),
            ],
            out_specs=pl.BlockSpec((Cout, tm), lambda i: (0, i)),
            compiler_params=pltpu.CompilerParams(
                dimension_semantics=("parallel",)),
            cost_estimate=pl.CostEstimate(
                flops=2 * Cout * K9 * M_pad,
                transcendentals=0,
                bytes_accessed=K9 * M_pad * in_bytes + Cout * K9 * in_bytes
                + Cout * M_pad * out_bytes),
        )(xt, wt, b2)

    # Q rearrange: (Cout, M) -> (B, ws*ws, Cout); drop any M padding first.
    out_t = out_t[:, :M]
    return jnp.transpose(out_t, (1, 0)).reshape(B, ws * ws, Cout)


def _reference_forward(x, weight, bias, window_size, input_dtype=jnp.float32):
    """Pure-jnp reference (direct 9-tap reflect conv).

    `input_dtype` lets the reference apply the same input quantization the kernel uses
    (bf16 inputs, f32 accumulation) so the comparison only measures kernel math.
    """
    B, P, Cin = x.shape
    ws = window_size
    Cout = weight.shape[0]
    xq = x.astype(input_dtype).astype(jnp.float32)
    wq = weight.astype(input_dtype).astype(jnp.float32)
    x4 = xq.reshape(B, ws, ws, Cin)
    x_pad = jnp.pad(x4, ((0, 0), (1, 1), (1, 1), (0, 0)), mode="reflect")
    w_hwio = jnp.transpose(wq, (2, 3, 1, 0))  # (3, 3, Cin, Cout)
    out = jnp.zeros((B, ws, ws, Cout), jnp.float32)
    for dh in range(3):
        for dw in range(3):
            out = out + jnp.einsum(
                "bhwi,io->bhwo",
                x_pad[:, dh:dh + ws, dw:dw + ws, :],
                w_hwio[dh, dw],
            )
    out = out + bias.astype(jnp.float32)[None, None, None, :]
    return out.astype(x.dtype).reshape(B, ws * ws, Cout)


def _run_case(embed_dim, num_classes, window_size, batch):
    key = jax.random.PRNGKey(0)
    kx, kw, kb = jax.random.split(key, 3)
    x = jax.random.normal(
        kx, (batch, window_size * window_size, embed_dim), dtype=jnp.float32)
    weight = 0.1 * jax.random.normal(
        kw, (num_classes, embed_dim, 3, 3), dtype=jnp.float32)  # PyTorch OIHW
    bias = 0.1 * jax.random.normal(kb, (num_classes,), dtype=jnp.float32)

    y = jax.block_until_ready(cnn_head_forward(x, weight, bias, window_size))
    y_ref = _reference_forward(x, weight, bias, window_size, input_dtype=jnp.bfloat16)

    assert y.shape == (batch, window_size * window_size, num_classes)
    err = float(jnp.max(jnp.abs(y.astype(jnp.float32) - y_ref.astype(jnp.float32))))
    assert jnp.allclose(y, y_ref, atol=1e-2, rtol=1e-2), f"max abs err {err}"


if __name__ == "__main__":
    # Toy config consistent with the module: gridless, whole problem resident in VMEM.
    _run_case(embed_dim=32, num_classes=8, window_size=16, batch=2)
    # Window size where B*ws*ws is not a multiple of 128: exercises the lane-padding path.
    _run_case(embed_dim=32, num_classes=8, window_size=12, batch=2)
    # Larger Cin/B: exercises the M-tiled, double-buffered "parallel" pipeline path.
    _run_case(embed_dim=128, num_classes=8, window_size=16, batch=24)

    print("KERNEL_OK")
</pallas_src>

<mosaic_0001>
module attributes {stable_mosaic.version = 11 : i64} {
  func.func @_cnn_head_kernel(%arg0: memref<288x512xbf16, #tpu.memory_space<vmem>>, %arg1: memref<8x288xbf16, #tpu.memory_space<vmem>>, %arg2: memref<8x1xf32, #tpu.memory_space<vmem>>, %arg3: memref<8x512xf32, #tpu.memory_space<vmem>>) attributes {dimension_semantics = [], scalar_prefetch = 0 : i64, scratch_operands = 0 : i64, tpu.core_type = #tpu.core_type<tc>} {
    %c0 = arith.constant 0 : index
    %c0_0 = arith.constant 0 : index
    %0 = vector.load %arg1[%c0, %c0_0] : memref<8x288xbf16, #tpu.memory_space<vmem>>, vector<8x288xbf16>
    %c0_1 = arith.constant 0 : index
    %c0_2 = arith.constant 0 : index
    %1 = vector.load %arg0[%c0_1, %c0_2] : memref<288x512xbf16, #tpu.memory_space<vmem>>, vector<288x512xbf16>
    %cst = arith.constant dense<0.000000e+00> : vector<8x512xf32>
    %2 = tpu.matmul %0, %1, %cst {dimension_numbers = #tpu.dot_dimension_numbers<[1], [0], [0], [1], [0, 0, 1, 1], [], []>} : vector<8x288xbf16>, vector<288x512xbf16>, vector<8x512xf32> -> vector<8x512xf32>
    %c0_3 = arith.constant 0 : index
    %c0_4 = arith.constant 0 : index
    %3 = vector.load %arg2[%c0_3, %c0_4] : memref<8x1xf32, #tpu.memory_space<vmem>>, vector<8x1xf32>
    %4 = vector.broadcast %3 : vector<8x1xf32> to vector<8x512xf32>
    %5 = arith.addf %2, %4 : vector<8x512xf32>
    %c0_5 = arith.constant 0 : index
    %c0_6 = arith.constant 0 : index
    %6 = vector.load %arg3[%c0_5, %c0_6] : memref<8x512xf32, #tpu.memory_space<vmem>>, vector<8x512xf32>
    tpu.vector_store %arg3[%c0_5, %c0_6], %5 {strides = array<i32>} : memref<8x512xf32, #tpu.memory_space<vmem>>, vector<8x512xf32>,
    return
  }
}

</mosaic_0001>

<bundles_post_ra>
// kernel: tpu_custom_call.1
= control target key start
LH: loop header
LB: loop body
LE: loop exit
PB: predicated region body
PF: predicated region fallthrough
CT: control target
= control target key end

     0   :  { %8 = vsyncpa [#allocation3], 0  ;;  %s982_s0 = inlined_call_operand.hbm [shape: bf16[288,512], index: 0, kind: input, shape index: {}]   ;;  %s983_s1 = inlined_call_operand.vmem [shape: bf16[8,288], index: 1, kind: input, shape index: {}]   ;;  %s984_s2 = inlined_call_operand.vmem [shape: f32[8,1], index: 2, kind: input, shape index: {}]   ;;  %s985_s3 = inlined_call_operand.hbm [shape: f32[8,512], index: 3, kind: output, shape index: {}]  }
   0x1   :  { %9 = vsyncpa [#allocation4], 0  ;;  %s921_s12 = smov [#allocation2]   ;;  %s873_s16 = scalar_lea.hbm %s982_s0, 9216 }
   0x2   :  { %s15_s13 = sshll.u32 %s921_s12, 4  ;;  %p874_p0 = scmp.ne.s32.totalorder %s982_s0, %s873_s16  ;;  %s16_s13 = int_to_ptr.vmem [resolvable:$true] %s15_s13 }
   0x3   :  { %p877_p1 = scmp.lt.u32.totalorder %s873_s16, %s982_s0 }
   0x5   :  { %p879_p2 = pnand %p877_p1, %p874_p0 }
   0x7   :  { %882 = shalt.err (!%p879_p2)
}
   0x8   :  { %s883_s21 = scalar_lea.vmem %s16_s13, 9216  ;;  %p888_p4 = scmp.lt.s32.totalorder %s16_s13, %s16_s13 }
   0x9   :  { %p884_p3 = scmp.ne.s32.totalorder %s16_s13, %s883_s21  ;;  %p889_p5 = scmp.lt.s32.totalorder %s883_s21, %s883_s21 }
   0xb   :  { %p890_p6 = por %p889_p5, %p888_p4 }
   0xd   :  { %p891_p7 = pnand %p890_p6, %p884_p3 }
   0xf   :  { %894 = shalt.err (!%p891_p7)
}
  0x10   :  { %s922_s22 = smov 256   ;;  %s923_s23 = smov 16  }
  0x11   :  { %21 = dma.hbm_to_vmem [thread:$0]  %s982_s0, 9216, %s16_s13, [#allocation3], %s922_s22, %s922_s22, %s923_s23  }
  0x12   :  { %917 = dma.done.wait [#allocation3], 9216  }
  0x13   :  { %918 = vsyncadd [#allocation3], 4294958080  ;;  %v924_v0 = vmov 0   ;;  %v762_v1 = vld [vmem:[#allocation2 + $0x4] ss:$16 sps:$4 sm:$0xff]   ;;  %vm480_vm0 = vcmask 261120  }
  0x14   :  { %761 = vset.pattern.permute.xlu0 %v924_v0  ;;  %v764_v2 = vld [vmem:[#allocation2 + $0xc] ss:$16 sps:$4 sm:$0xff]   ;;  %484 = vmatprep.subr.bf16.mxu0 %v762_v1  ;;  %v766_v3 = vld [vmem:[#allocation2] ss:$16 sps:$4 sm:$0xff]   ;;  %v767_v4 = vld [vmem:[#allocation2 + $0x8] ss:$16 sps:$4 sm:$0xff]  }
  0x15   :  { %566 = vmatprep.subr.bf16.mxu1 %v764_v2  ;;  %v768_v5 = vld [vmem:[#allocation2 + $0x24] ss:$16 sps:$4 sm:$0xff]   ;;  %485 = vmatpush1.bf16.msra.mxu0 %v766_v3  ;;  %v770_v6 = vld [vmem:[#allocation2 + $0x2c] ss:$16 sps:$4 sm:$0xff]   ;;  %v772_v7 = vld [vmem:[#allocation2 + $0x20] ss:$16 sps:$4 sm:$0xff]  }
  0x16   :  { %567 = vmatpush1.bf16.msra.mxu1 %v767_v4  ;;  %486 = vmatprep.subr.bf16.mxu0 %v768_v5  ;;  %v773_v8 = vld [vmem:[#allocation2 + $0x28] ss:$16 sps:$4 sm:$0xff]   ;;  %v774_v9 = vld [vmem:[#allocation2 + $0x44] ss:$16 sps:$4 sm:$0xff]   ;;  %v776_v10 = vld [vmem:[#allocation2 + $0x4c] ss:$16 sps:$4 sm:$0xff]  }
  0x17   :  { %568 = vmatprep.subr.bf16.mxu1 %v770_v6  ;;  %v778_v11 = vld [vmem:[#allocation2 + $0x40] ss:$16 sps:$4 sm:$0xff]   ;;  %v779_v12 = vld [vmem:[#allocation2 + $0x48] ss:$16 sps:$4 sm:$0xff]   ;;  %v780_v13 = vld [vmem:[#allocation2 + $0x64] ss:$16 sps:$4 sm:$0xff]  }
  0x18   :  { %v782_v14 = vld [vmem:[#allocation2 + $0x6c] ss:$16 sps:$4 sm:$0xff]   ;;  %v784_v15 = vld [vmem:[#allocation2 + $0x60] ss:$16 sps:$4 sm:$0xff]   ;;  %v785_v16 = vld [vmem:[#allocation2 + $0x68] ss:$16 sps:$4 sm:$0xff]  }
  0x19   :  { %487 = vmatpush1.bf16.msra.mxu0 %v772_v7  ;;  %v786_v17 = vld [vmem:[#allocation2 + $0x84] ss:$16 sps:$4 sm:$0xff]   ;;  %v788_v18 = vld [vmem:[#allocation2 + $0x8c] ss:$16 sps:$4 sm:$0xff]   ;;  %v790_v19 = vld [vmem:[#allocation2 + $0x80] ss:$16 sps:$4 sm:$0xff]  }
  0x1a   :  { %569 = vmatpush1.bf16.msra.mxu1 %v773_v8  ;;  %488 = vmatprep.subr.bf16.mxu0 %v774_v9  ;;  %v791_v20 = vld [vmem:[#allocation2 + $0x88] ss:$16 sps:$4 sm:$0xff]   ;;  %v792_v21 = vld [vmem:[#allocation2 + $0xa4] ss:$16 sps:$4 sm:$0xff]   ;;  %v794_v22 = vld [vmem:[#allocation2 + $0xac] ss:$16 sps:$4 sm:$0xff]  }
  0x1b   :  { %570 = vmatprep.subr.bf16.mxu1 %v776_v10  ;;  %v796_v23 = vld [vmem:[#allocation2 + $0xa0] ss:$16 sps:$4 sm:$0xff]   ;;  %v797_v24 = vld [vmem:[#allocation2 + $0xa8] ss:$16 sps:$4 sm:$0xff]   ;;  %v798_v25 = vld [vmem:[#allocation2 + $0xc4] ss:$16 sps:$4 sm:$0xff]  }
  0x1c   :  { %v800_v26 = vld [vmem:[#allocation2 + $0xcc] ss:$16 sps:$4 sm:$0xff]   ;;  %v802_v27 = vld [vmem:[#allocation2 + $0xc0] ss:$16 sps:$4 sm:$0xff]   ;;  %v803_v28 = vld [vmem:[#allocation2 + $0xc8] ss:$16 sps:$4 sm:$0xff]  }
  0x1d   :  { %489 = vmatpush1.bf16.msra.mxu0 %v778_v11  ;;  %v804_v29 = vld [vmem:[#allocation2 + $0xe4] ss:$16 sps:$4 sm:$0xff]   ;;  %v806_v30 = vld [vmem:[#allocation2 + $0xec] ss:$16 sps:$4 sm:$0xff]   ;;  %v808_v31 = vld [vmem:[#allocation2 + $0xe0] ss:$16 sps:$4 sm:$0xff]  }
  0x1e   :  { %571 = vmatpush1.bf16.msra.mxu1 %v779_v12  ;;  %490 = vmatprep.subr.bf16.mxu0 %v780_v13  ;;  %v809_v32 = vld [vmem:[#allocation2 + $0xe8] ss:$16 sps:$4 sm:$0xff]   ;;  %v810_v33 = vld [vmem:[#allocation2 + $0x104] ss:$16 sps:$4 sm:$0xff]   ;;  %v812_v34 = vld [vmem:[#allocation2 + $0x10c] ss:$16 sps:$4 sm:$0xff]  }
  0x1f   :  { %572 = vmatprep.subr.bf16.mxu1 %v782_v14  ;;  %v814_v35 = vld [vmem:[#allocation2 + $0x100] ss:$16 sps:$4 sm:$0xff]   ;;  %v815_v36 = vld [vmem:[#allocation2 + $0x108] ss:$16 sps:$4 sm:$0xff]   ;;  %v816_v37 = vld [vmem:[#allocation2 + $0x124] ss:$16 sps:$4 sm:$0xff]  }
  0x20   :  { %v818_v38 = vld [vmem:[#allocation2 + $0x12c] ss:$16 sps:$4 sm:$0xff]   ;;  %v820_v39 = vld [vmem:[#allocation2 + $0x120] ss:$16 sps:$4 sm:$0xff]   ;;  %v821_v40 = vld [vmem:[#allocation2 + $0x128] ss:$16 sps:$4 sm:$0xff]  }
  0x21   :  { %491 = vmatpush1.bf16.msra.mxu0 %v784_v15  ;;  %v822_v41 = vld [vmem:[#allocation2 + $0x144] ss:$16 sps:$4 sm:$0xff]   ;;  %v824_v42 = vld [vmem:[#allocation2 + $0x14c] ss:$16 sps:$4 sm:$0xff]   ;;  %v826_v43 = vld [vmem:[#allocation2 + $0x140] ss:$16 sps:$4 sm:$0xff]  }
  0x22   :  { %573 = vmatpush1.bf16.msra.mxu1 %v785_v16  ;;  %492 = vmatprep.subr.bf16.mxu0 %v786_v17  ;;  %v827_v44 = vld [vmem:[#allocation2 + $0x148] ss:$16 sps:$4 sm:$0xff]   ;;  %v828_v45 = vld [vmem:[#allocation2 + $0x164] ss:$16 sps:$4 sm:$0xff]   ;;  %v830_v46 = vld [vmem:[#allocation2 + $0x16c] ss:$16 sps:$4 sm:$0xff]  }
  0x23   :  { %574 = vmatprep.subr.bf16.mxu1 %v788_v18  ;;  %v30_v47 = vld [vmem:[%s983_s1] sm:$0xff]  ;;  %v833_v50 = vld [vmem:[#allocation2 + $0x168] ss:$16 sps:$4 sm:$0xff]   ;;  %v836_v52 = vld [vmem:[#allocation2 + $0x18c] ss:$16 sps:$4 sm:$0xff]   ;;  %s925_s30 = smov [#allocation5]  }
  0x24   :  { %v832_v48 = vld [vmem:[#allocation2 + $0x160] ss:$16 sps:$4 sm:$0xff]   ;;  %v668_v49 = vcombine.high %v30_v47, %v30_v47  ;;  %v834_v51 = vld [vmem:[#allocation2 + $0x184] ss:$16 sps:$4 sm:$0xff]   ;;  %v839_v54 = vld [vmem:[#allocation2 + $0x188] ss:$16 sps:$4 sm:$0xff]   ;;  %v667_v7 = vcombine.low %v30_v47, %v30_v47 }
  0x25   :  { %493 = vmatpush1.bf16.msra.mxu0 %v790_v19  ;;  %v838_v53 = vld [vmem:[#allocation2 + $0x180] ss:$16 sps:$4 sm:$0xff]   ;;  %v840_v55 = vld [vmem:[#allocation2 + $0x1a4] ss:$16 sps:$4 sm:$0xff]   ;;  %v842_v56 = vld [vmem:[#allocation2 + $0x1ac] ss:$16 sps:$4 sm:$0xff]  }
  0x26   :  { %575 = vmatpush1.bf16.msra.mxu1 %v791_v20  ;;  %494 = vmatprep.subr.bf16.mxu0 %v792_v21  ;;  %v104_v57 = vld [vmem:[%s984_s2] sm:$0xff]  ;;  %v845_v59 = vld [vmem:[#allocation2 + $0x1a8] ss:$16 sps:$4 sm:$0xff]   ;;  %v848_v61 = vld [vmem:[#allocation2 + $0x1cc] ss:$16 sps:$4 sm:$0xff]   ;;  %s658_s4 = sshll.u32 %s925_s30, 4  ;;  %s659_s4 = int_to_ptr.vmem [resolvable:$true] %s658_s4 }
  0x27   :  { %576 = vmatprep.subr.bf16.mxu1 %v794_v22  ;;  %516 = vmatprep.mubr.bf16.mxu0 %v668_v49  ;;  %v844_v58 = vld [vmem:[#allocation2 + $0x1a0] ss:$16 sps:$4 sm:$0xff]   ;;  %v846_v60 = vld [vmem:[#allocation2 + $0x1c4] ss:$16 sps:$4 sm:$0xff]   ;;  %v851_v63 = vld [vmem:[#allocation2 + $0x1c8] ss:$16 sps:$4 sm:$0xff]   ;;  %p900_p9 = scmp.lt.s32.totalorder %s659_s4, %s659_s4 }
  0x28   :  { %598 = vmatprep.mubr.bf16.mxu1 %v668_v49  ;;  %107 = vperm.xlu0 %761, %v104_v57   ;;  %v850_v62 = vld [vmem:[#allocation2 + $0x1c0] ss:$16 sps:$4 sm:$0xff]   ;;  %v852_v1 = vld [vmem:[#allocation2 + $0x1e4] ss:$16 sps:$4 sm:$0xff]   ;;  %v854_v2 = vld [vmem:[#allocation2 + $0x1ec] ss:$16 sps:$4 sm:$0xff]  }
  0x29   :  { %495 = vmatpush1.bf16.msra.mxu0 %v796_v23  ;;  %v856_v3 = vld [vmem:[#allocation2 + $0x1e0] ss:$16 sps:$4 sm:$0xff]   ;;  %v857_v4 = vld [vmem:[#allocation2 + $0x1e8] ss:$16 sps:$4 sm:$0xff]   ;;  %v862_v5 = vld [vmem:[#allocation2 + $0x204] ss:$16 sps:$4 sm:$0xff]  }
  0x2a   :  { %577 = vmatpush1.bf16.msra.mxu1 %v797_v24  ;;  %496 = vmatprep.subr.bf16.mxu0 %v798_v25  ;;  %v865_v6 = vld [vmem:[#allocation2 + $0x20c] ss:$16 sps:$4 sm:$0xff]   ;;  %v860_v8 = vld [vmem:[#allocation2 + $0x200] ss:$16 sps:$4 sm:$0xff]   ;;  %v863_v9 = vld [vmem:[#allocation2 + $0x208] ss:$16 sps:$4 sm:$0xff]  }
  0x2b   :  { %578 = vmatprep.subr.bf16.mxu1 %v800_v26  ;;  %v868_v10 = vld [vmem:[#allocation2 + $0x224] ss:$16 sps:$4 sm:$0xff]   ;;  %v871_v11 = vld [vmem:[#allocation2 + $0x22c] ss:$16 sps:$4 sm:$0xff]   ;;  %v866_v12 = vld [vmem:[#allocation2 + $0x220] ss:$16 sps:$4 sm:$0xff]  }
  0x2c   :  { %v869_v13 = vld [vmem:[#allocation2 + $0x228] ss:$16 sps:$4 sm:$0xff]  }
  0x2d   :  { %497 = vmatpush1.bf16.msra.mxu0 %v802_v27  ;;  %v872_v14 = vld [vmem:[%s983_s1 + $0x8] ss:$0 sps:$4 sm:$0xff]   ;;  %s895_s1 = scalar_lea.vmem %s659_s4, 512 }
  0x2e   :  { %579 = vmatpush1.bf16.msra.mxu1 %v803_v28  ;;  %498 = vmatprep.subr.bf16.mxu0 %v804_v29  ;;  %p896_p8 = scmp.ne.s32.totalorder %s659_s4, %s895_s1  ;;  %p901_p10 = scmp.lt.s32.totalorder %s895_s1, %s895_s1 }
  0x2f   :  { %580 = vmatprep.subr.bf16.mxu1 %v806_v30 }
  0x30   :  { %p902_p11 = por %p901_p10, %p900_p9 }
  0x31   :  { %499 = vmatpush1.bf16.msra.mxu0 %v808_v31 }
  0x32   :  { %581 = vmatpush1.bf16.msra.mxu1 %v809_v32  ;;  %500 = vmatprep.subr.bf16.mxu0 %v810_v33  ;;  %p903_p12 = pnand %p902_p11, %p896_p8 }
  0x33   :  { %582 = vmatprep.subr.bf16.mxu1 %v812_v34 }
  0x35   :  { %501 = vmatpush1.bf16.msra.mxu0 %v814_v35 }
  0x36   :  { %583 = vmatpush1.bf16.msra.mxu1 %v815_v36  ;;  %502 = vmatprep.subr.bf16.mxu0 %v816_v37 }
  0x37   :  { %584 = vmatprep.subr.bf16.mxu1 %v818_v38 }
  0x39   :  { %503 = vmatpush1.bf16.msra.mxu0 %v820_v39 }
  0x3a   :  { %585 = vmatpush1.bf16.msra.mxu1 %v821_v40  ;;  %504 = vmatprep.subr.bf16.mxu0 %v822_v41 }
  0x3b   :  { %586 = vmatprep.subr.bf16.mxu1 %v824_v42 }
  0x3d   :  { %505 = vmatpush1.bf16.msra.mxu0 %v826_v43 }
  0x3e   :  { %587 = vmatpush1.bf16.msra.mxu1 %v827_v44  ;;  %506 = vmatprep.subr.bf16.mxu0 %v828_v45 }
  0x3f   :  { %588 = vmatprep.subr.bf16.mxu1 %v830_v46 }
  0x41   :  { %507 = vmatpush1.bf16.msra.mxu0 %v832_v48 }
  0x42   :  { %589 = vmatpush1.bf16.msra.mxu1 %v833_v50  ;;  %508 = vmatprep.subr.bf16.mxu0 %v834_v51 }
  0x43   :  { %590 = vmatprep.subr.bf16.mxu1 %v836_v52 }
  0x45   :  { %509 = vmatpush1.bf16.msra.mxu0 %v838_v53 }
  0x46   :  { %591 = vmatpush1.bf16.msra.mxu1 %v839_v54  ;;  %510 = vmatprep.subr.bf16.mxu0 %v840_v55 }
  0x47   :  { %592 = vmatprep.subr.bf16.mxu1 %v842_v56 }
  0x49   :  { %511 = vmatpush1.bf16.msra.mxu0 %v844_v58 }
  0x4a   :  { %593 = vmatpush1.bf16.msra.mxu1 %v845_v59  ;;  %512 = vmatprep.subr.bf16.mxu0 %v846_v60 }
  0x4b   :  { %594 = vmatprep.subr.bf16.mxu1 %v848_v61 }
  0x4d   :  { %513 = vmatpush1.bf16.msra.mxu0 %v850_v62 }
  0x4e   :  { %595 = vmatpush1.bf16.msra.mxu1 %v851_v63  ;;  %514 = vmatprep.subr.bf16.mxu0 %v852_v1 }
  0x4f   :  { %596 = vmatprep.subr.bf16.mxu1 %v854_v2 }
  0x51   :  { %515 = vmatpush1.bf16.msra.mxu0 %v856_v3 }
  0x52   :  { %597 = vmatpush1.bf16.msra.mxu1 %v857_v4  ;;  %525 = vmatprep.subr.bf16.mxu0 %v862_v5 }
  0x53   :  { %607 = vmatprep.subr.bf16.mxu1 %v865_v6 }
  0x54   :  { %517 = vmatmul.mubr.bf16.vlgmr.msra.gmra.mrb[0].mxu0 %v667_v7 }
  0x55   :  { %599 = vmatmul.mubr.bf16.vlgmr.msra.gmra.mrb[0].mxu1 %v667_v7  ;;  %526 = vmatpush1.bf16.msra.mxu0 %v860_v8 }
  0x56   :  { %608 = vmatpush1.bf16.msra.mxu1 %v863_v9  ;;  %527 = vmatprep.subr.bf16.mxu0 %v868_v10 }
  0x57   :  { %609 = vmatprep.subr.bf16.mxu1 %v871_v11  ;;  %557 = vmatprep.mubr.bf16.mxu0 %v924_v0 }
  0x58   :  { %639 = vmatprep.mubr.bf16.mxu1 %v924_v0 }
  0x59   :  { %528 = vmatpush1.bf16.msra.mxu0 %v866_v12 }
  0x5a   :  { %610 = vmatpush1.bf16.msra.mxu1 %v869_v13 }
  0x60   :  { %742 = vmatmul.mubr.msk.bf16.vlgmr.msra.gmra.mrb[0].mxu0 %vm480_vm0, %v872_v14 }
  0x61   :  { %743 = vmatmul.mubr.msk.bf16.vlgmr.msra.gmra.mrb[0].mxu1 %vm480_vm0, %v872_v14 }
  0xa7   :  { %v108_v15 = vpop.permute.xlu0 %107 }
 0x133   :  { %v559_v16 = vpop.f32.mrb[0].mxu0 }
 0x134   :  { %v641_v17 = vpop.f32.mrb[0].mxu1  ;;  %v744_v18 = vadd.f32 %v559_v16, %v108_v15  ;;  %v561_v20 = vpop.f32.mrb[1].mxu0 }
 0x135   :  { %v746_v19 = vadd.f32 %v641_v17, %v108_v15  ;;  %v643_v21 = vpop.f32.mrb[1].mxu1  ;;  %v745_v22 = vadd.f32 %v561_v20, %v108_v15  ;;  %v563_v23 = vpop.f32.mrb[2].mxu0 }
 0x136   :  { %v747_v0 = vadd.f32 %v643_v21, %v108_v15  ;;  %v645_v24 = vpop.f32.mrb[2].mxu1  ;;  %648 = vst [vmem:[#allocation5] sm:$0xff] %v744_v18  ;;  %v564_v25 = vpop.f32.mrb[3].mxu0 }
 0x137   :  { %650 = vst [vmem:[#allocation5 + $0x10] sm:$0xff] %v746_v19  ;;  %v646_v26 = vpop.f32.mrb[3].mxu1  ;;  %649 = vst [vmem:[#allocation5 + $0x8] sm:$0xff] %v745_v22 }
 0x138   :  { %651 = vst [vmem:[#allocation5 + $0x18] sm:$0xff] %v747_v0 }
 0x139   :  { %906 = shalt.err (!%p903_p12)
}
 0x13a   :  { %s907_s7 = scalar_lea.hbm %s985_s3, 512 }
 0x13b   :  { %p908_p13 = scmp.ne.s32.totalorder %s985_s3, %s907_s7  ;;  %p911_p0 = scmp.lt.u32.totalorder %s907_s7, %s985_s3 }
 0x13d   :  { %p913_p1 = pnand %p911_p0, %p908_p13 }
 0x13f   :  { %916 = shalt.err (!%p913_p1)
}
 0x140   :  { %661 = dma.vmem_to_hbm [thread:$0]  %s659_s4, 512, %s985_s3, [#allocation4]  }
 0x141   :  { %919 = dma.done.wait [#allocation4], 512  }
 0x142   :  { %920 = vsyncadd [#allocation4], 4294966784 }
 0x143   :  { %665 = vsyncpa [#allocation3], 1 }
 0x144   :  { %666 = vsyncpa [#allocation4], 1 }

</bundles_post_ra>
